<compile_context>
chip_gen: v7x
topology: tpu7x:2x2x1
jax: 0.10.0
libtpu: 0.0.40
codegen_flags: <defaults>
</compile_context>

<pallas_src>
import functools

import jax
import jax.numpy as jnp
from jax import lax
from jax.experimental import pallas as pl
from jax.experimental.pallas import tpu as pltpu

LANES = 128            # lane-dense output width
N_TRANS = 2            # translation_layer output dim
N_CLICK = 4            # click_logits_layer output dim
CLICK_START = N_TRANS                 # lanes [2, 6): click logits
CLICK_END = N_TRANS + N_CLICK
PROBS_START = CLICK_END               # lanes [6, 10): click probs
PROBS_END = PROBS_START + N_CLICK
LOGP_START = PROBS_END                # lanes [10, 14): click log-softmax
LOGP_END = LOGP_START + N_CLICK


def _policy_head_kernel(x_ref, w_ref, b_ref, out_ref):
    """Fused PolicyHead forward for one row tile.

    x_ref   : (TM, D)      input features (native dtype, e.g. bf16 or f32)
    w_ref   : (D, LANES)   fused weights: trans cols [0,2); click cols
                           triplicated into [2,6), [6,10), [10,14); rest zero
    b_ref   : (1, LANES)   fused f32 bias (same lane layout)
    out_ref : (TM, LANES)  packed f32 output slab
    """
    # Single MXU pass produces both heads, f32 accumulate.
    fused = jnp.dot(x_ref[...], w_ref[...],
                    preferred_element_type=jnp.float32) + b_ref[...]

    tm = fused.shape[0]
    lane = lax.broadcasted_iota(jnp.int32, (tm, LANES), 1)
    in_click = jnp.logical_and(lane >= CLICK_START, lane < CLICK_END)  # [2, 6)

    # Masked, numerically-stable log-sum-exp over the 4 real click lanes.
    # exp(-inf) = 0 on non-click lanes, so the sum needs no second mask.
    neg_inf = jnp.float32(-jnp.inf)
    masked = jnp.where(in_click, fused, neg_inf)
    row_max = jnp.max(masked, axis=-1, keepdims=True)
    sum_exp = jnp.sum(jnp.exp(masked - row_max), axis=-1, keepdims=True)
    lse = row_max + jnp.log(sum_exp)

    # shifted = log_softmax on every lane that carries click logits ([2,14)).
    shifted = fused - lse

    # Packed, lane-dense output (two blends):
    #   [0,6)   : translation + click logits        (fused)
    #   [6,10)  : click probs = exp(log_softmax)    (exp(shifted))
    #   [10,..) : click log-softmax; lanes >= 14 are don't-care (never read).
    out_ref[...] = jnp.where(
        lane < CLICK_END, fused,
        jnp.where(lane < PROBS_END, jnp.exp(shifted), shifted))


def _round_up(x, m):
    return ((x + m - 1) // m) * m


def _vmem_bytes(tm, d, x_itemsize):
    """Pessimistic per-kernel VMEM footprint: double-buffered BlockSpec
    operands (incl. the grid-invariant fused W and the sublane-padded bias)
    plus full-width f32 elementwise intermediates inside the kernel."""
    bufs = (2 * tm * d * x_itemsize          # x tile, double-buffered
            + 2 * d * LANES * x_itemsize     # fused W (resident, still 2 bufs)
            + 2 * 8 * LANES * 4              # bias, padded to 8 sublanes
            + 2 * tm * LANES * 4)            # f32 output slab, double-buffered
    temps = 10 * tm * LANES * 4              # fused/masked/exp/where temporaries
    return bufs + temps


def _pick_tile_m(m, d, x_itemsize, budget=40 << 20):
    """Largest row tile whose footprint fits `budget` (safe under v7x's
    64 MiB/TC; v5e/v6e have 128 MiB physical, so this is conservative there)."""
    tm = 2048
    while tm > 64 and _vmem_bytes(tm, d, x_itemsize) > budget:
        tm //= 2
    return max(8, min(tm, _round_up(m, 8)))


@functools.partial(jax.jit, static_argnames=("tile_m",))
def _policy_head_forward_impl(params, input_data, target_actions, tile_m):
    B, T, D = input_data.shape
    M = B * T

    # Keep the native dtype: no .astype(f32) (that would be a full extra HBM
    # pass); bf16 inputs get a bf16 MXU pass with f32 accumulation.
    x2d = input_data.reshape(M, D)
    x_itemsize = jnp.dtype(x2d.dtype).itemsize

    if tile_m is not None:
        tm = _round_up(tile_m, 8)
    else:
        tm = _pick_tile_m(M, D, x_itemsize)
    tm = min(tm, _round_up(M, 8))
    grid = (pl.cdiv(M, tm),)      # ragged last block handled by Pallas masking

    # Fused lane-padded weight in the input dtype; click weights triplicated so
    # logits / probs / log-probs all come out lane-dense with no XLU rolls.
    cdtype = x2d.dtype
    w_t = params["w_trans"].astype(cdtype).T                       # (D, 2)
    w_c = params["w_click"].astype(cdtype).T                       # (D, 4)
    w_fused = jnp.concatenate(
        [w_t, w_c, w_c, w_c, jnp.zeros((D, LANES - LOGP_END), cdtype)], axis=1)
    b_t = params["b_trans"].astype(jnp.float32)
    b_c = params["b_click"].astype(jnp.float32)
    b_fused = jnp.concatenate(
        [b_t, b_c, b_c, b_c,
         jnp.zeros((LANES - LOGP_END,), jnp.float32)])[None, :]    # (1, 128)

    vmem_limit = int(max(_vmem_bytes(tm, D, x_itemsize) + (4 << 20), 32 << 20))

    out = pl.pallas_call(
        _policy_head_kernel,
        out_shape=jax.ShapeDtypeStruct((M, LANES), jnp.float32),
        grid_spec=pltpu.PrefetchScalarGridSpec(
            num_scalar_prefetch=0,
            grid=grid,
            in_specs=[
                pl.BlockSpec((tm, D), lambda i: (i, 0)),       # x rows (tiled)
                pl.BlockSpec((D, LANES), lambda i: (0, 0)),    # fused W (resident)
                pl.BlockSpec((1, LANES), lambda i: (0, 0)),    # fused b (resident)
            ],
            out_specs=pl.BlockSpec((tm, LANES), lambda i: (i, 0)),
        ),
        compiler_params=pltpu.CompilerParams(
            dimension_semantics=("parallel",),    # megacore-shards the row grid
            vmem_limit_bytes=vmem_limit),
    )(x2d, w_fused, b_fused)

    translation = out[:, 0:N_TRANS].reshape(B, T, N_TRANS)
    click_logits = out[:, CLICK_START:CLICK_END].reshape(B, T, N_CLICK)
    click_probs = out[:, PROBS_START:PROBS_END].reshape(B, T, N_CLICK)
    log_probs = out[:, LOGP_START:LOGP_END].reshape(B, T, N_CLICK)

    logp = None
    if target_actions is not None:
        # Categorical(logits).log_prob(argmax(target[..., 2:])) — the 4-wide
        # selection is trivial, done by XLA on the sliced slab.
        idx = jnp.argmax(target_actions[..., N_TRANS:], axis=-1)
        logp = jnp.take_along_axis(log_probs, idx[..., None], axis=-1)[..., 0]
    return translation, click_probs, click_logits, logp


def policy_head_forward(params, input_data, target_actions=None, tile_m=None):
    """JAX/Pallas equivalent of PolicyHead.forward.

    Returns (translation_actions (B,T,2), click_probs (B,T,4) [Categorical.probs],
             click_logits (B,T,4), logp_actions (B,T) or None).
    """
    # TODO(synk): torch.distributions.Categorical object / click_sample sampling
    # has no Pallas equivalent; the distribution is returned as its probs/logits.
    return _policy_head_forward_impl(params, input_data, target_actions, tile_m)


def init_policy_head_params(key, input_dim, scale=0.01):
    """Deterministic init mirroring reset_parameters(): row-normalized weights
    scaled by 0.01 (fan_in_linear), zero biases."""
    k1, k2 = jax.random.split(key)
    w_t = jax.random.normal(k1, (N_TRANS, input_dim), jnp.float32)
    w_t = w_t * (scale / jnp.linalg.norm(w_t, axis=1, keepdims=True))
    w_c = jax.random.normal(k2, (N_CLICK, input_dim), jnp.float32)
    w_c = w_c * (scale / jnp.linalg.norm(w_c, axis=1, keepdims=True))
    return {"w_trans": w_t, "b_trans": jnp.zeros((N_TRANS,), jnp.float32),
            "w_click": w_c, "b_click": jnp.zeros((N_CLICK,), jnp.float32)}


if __name__ == "__main__":
    B, T, D = 2, 8, 32
    key = jax.random.PRNGKey(0)
    k_param, k_x, k_a = jax.random.split(key, 3)

    params = init_policy_head_params(k_param, D)
    input_data = jax.random.normal(k_x, (B, T, D), jnp.float32)
    target_actions = jax.random.normal(k_a, (B, T, N_TRANS + N_CLICK), jnp.float32)

    trans, click_probs, click_logits, logp = policy_head_forward(
        params, input_data, target_actions)
    jax.block_until_ready((trans, click_probs, click_logits, logp))

    # Pure-JAX reference.
    ref_trans = input_data @ params["w_trans"].T + params["b_trans"]
    ref_logits = input_data @ params["w_click"].T + params["b_click"]
    ref_probs = jax.nn.softmax(ref_logits, axis=-1)
    ref_idx = jnp.argmax(target_actions[:, :, 2:], axis=-1)
    ref_logp = jnp.take_along_axis(jax.nn.log_softmax(ref_logits, axis=-1),
                                   ref_idx[..., None], axis=-1)[..., 0]
    assert jnp.allclose(trans, ref_trans, atol=1e-5)
    assert jnp.allclose(click_logits, ref_logits, atol=1e-5)
    assert jnp.allclose(click_probs, ref_probs, atol=1e-5)
    assert jnp.allclose(logp, ref_logp, atol=1e-5)

    # target_actions=None path (logp must be None).
    trans2, probs2, logits2, logp2 = policy_head_forward(params, input_data, None)
    jax.block_until_ready((trans2, probs2, logits2))
    assert logp2 is None
    assert jnp.allclose(logits2, ref_logits, atol=1e-5)

    # Multi-tile + ragged last block (grid > 1, M not a multiple of the tile).
    B2, T2 = 3, 50
    x2 = jax.random.normal(jax.random.PRNGKey(1), (B2, T2, D), jnp.float32)
    tgt2 = jax.random.normal(jax.random.PRNGKey(2), (B2, T2, N_TRANS + N_CLICK),
                             jnp.float32)
    trans3, probs3, logits3, logp3 = policy_head_forward(params, x2, tgt2, tile_m=64)
    jax.block_until_ready((trans3, probs3, logits3, logp3))
    ref_logits3 = x2 @ params["w_click"].T + params["b_click"]
    ref_idx3 = jnp.argmax(tgt2[:, :, 2:], axis=-1)
    ref_logp3 = jnp.take_along_axis(jax.nn.log_softmax(ref_logits3, axis=-1),
                                    ref_idx3[..., None], axis=-1)[..., 0]
    assert jnp.allclose(trans3, x2 @ params["w_trans"].T + params["b_trans"], atol=1e-5)
    assert jnp.allclose(logits3, ref_logits3, atol=1e-5)
    assert jnp.allclose(probs3, jax.nn.softmax(ref_logits3, axis=-1), atol=1e-5)
    assert jnp.allclose(logp3, ref_logp3, atol=1e-5)

    # bf16 input path (halved input DMA, bf16 MXU pass, f32 accumulate/softmax).
    x_bf = input_data.astype(jnp.bfloat16)
    trans4, probs4, logits4, logp4 = policy_head_forward(params, x_bf, target_actions)
    jax.block_until_ready((trans4, probs4, logits4, logp4))
    xb32 = x_bf.astype(jnp.float32)
    ref_logits_bf = xb32 @ params["w_click"].T + params["b_click"]
    assert jnp.allclose(logits4, ref_logits_bf, atol=5e-3)
    assert jnp.allclose(probs4, jax.nn.softmax(ref_logits_bf, axis=-1), atol=5e-3)
    assert jnp.allclose(trans4, xb32 @ params["w_trans"].T + params["b_trans"], atol=5e-3)

    print("KERNEL_OK")
</pallas_src>

<mosaic_0001>
module attributes {stable_mosaic.version = 11 : i64} {
  func.func @_policy_head_kernel(%arg0: i32, %arg1: memref<16x32xf32, #tpu.memory_space<vmem>>, %arg2: memref<32x128xf32, #tpu.memory_space<vmem>>, %arg3: memref<1x128xf32, #tpu.memory_space<vmem>>, %arg4: memref<16x128xf32, #tpu.memory_space<vmem>>) attributes {dimension_semantics = [#tpu.dimension_semantics<parallel>], iteration_bounds = array<i64: 1>, scalar_prefetch = 0 : i64, scratch_operands = 0 : i64, tpu.core_type = #tpu.core_type<tc>, window_params = [{transform_indices = @transform_0, window_bounds = array<i64: 16, 32>}, {pipeline_mode = #tpu.pipeline_mode<synchronous>, transform_indices = @transform_1, window_bounds = array<i64: 32, 128>}, {pipeline_mode = #tpu.pipeline_mode<synchronous>, transform_indices = @transform_2, window_bounds = array<i64: 1, 128>}, {transform_indices = @transform_3, window_bounds = array<i64: 16, 128>}]} {
    %c0 = arith.constant 0 : index
    %c0_0 = arith.constant 0 : index
    %0 = vector.load %arg1[%c0, %c0_0] : memref<16x32xf32, #tpu.memory_space<vmem>>, vector<16x32xf32>
    %c0_1 = arith.constant 0 : index
    %c0_2 = arith.constant 0 : index
    %1 = vector.load %arg2[%c0_1, %c0_2] : memref<32x128xf32, #tpu.memory_space<vmem>>, vector<32x128xf32>
    %cst = arith.constant dense<0.000000e+00> : vector<16x128xf32>
    %2 = tpu.matmul %0, %1, %cst {dimension_numbers = #tpu.dot_dimension_numbers<[1], [0], [0], [1], [0, 0, 1, 1], [], []>} : vector<16x32xf32>, vector<32x128xf32>, vector<16x128xf32> -> vector<16x128xf32>
    %c0_3 = arith.constant 0 : index
    %c0_4 = arith.constant 0 : index
    %3 = vector.load %arg3[%c0_3, %c0_4] : memref<1x128xf32, #tpu.memory_space<vmem>>, vector<1x128xf32>
    %4 = vector.broadcast %3 : vector<1x128xf32> to vector<16x128xf32>
    %5 = arith.addf %2, %4 : vector<16x128xf32>
    %6 = tpu.iota {dimensions = array<i32: 1>} : vector<16x128xi32>
    %c2_i32 = arith.constant 2 : i32
    %7 = vector.broadcast %c2_i32 : i32 to vector<16x128xi32>
    %8 = arith.cmpi sge, %6, %7 : vector<16x128xi32>
    %c6_i32 = arith.constant 6 : i32
    %9 = vector.broadcast %c6_i32 : i32 to vector<16x128xi32>
    %10 = arith.cmpi slt, %6, %9 : vector<16x128xi32>
    %11 = arith.andi %8, %10 : vector<16x128xi1>
    %cst_5 = arith.constant 0xFF800000 : f32
    %12 = vector.broadcast %cst_5 : f32 to vector<16x128xf32>
    %13 = arith.select %11, %5, %12 : vector<16x128xi1>, vector<16x128xf32>
    %cst_6 = arith.constant dense<0xFF800000> : vector<16xf32>
    %14 = vector.multi_reduction <maximumf>, %13, %cst_6 [1] : vector<16x128xf32> to vector<16xf32>
    %15 = vector.shape_cast %14 : vector<16xf32> to vector<16x1xf32>
    %16 = vector.broadcast %15 : vector<16x1xf32> to vector<16x128xf32>
    %17 = arith.subf %13, %16 : vector<16x128xf32>
    %18 = math.exp %17 : vector<16x128xf32>
    %cst_7 = arith.constant dense<0.000000e+00> : vector<16xf32>
    %19 = vector.multi_reduction <add>, %18, %cst_7 [1] : vector<16x128xf32> to vector<16xf32>
    %20 = vector.shape_cast %19 : vector<16xf32> to vector<16x1xf32>
    %21 = math.log %20 : vector<16x1xf32>
    %22 = arith.addf %15, %21 : vector<16x1xf32>
    %23 = vector.broadcast %22 : vector<16x1xf32> to vector<16x128xf32>
    %24 = arith.subf %5, %23 : vector<16x128xf32>
    %c6_i32_8 = arith.constant 6 : i32
    %25 = vector.broadcast %c6_i32_8 : i32 to vector<16x128xi32>
    %26 = arith.cmpi slt, %6, %25 : vector<16x128xi32>
    %c10_i32 = arith.constant 10 : i32
    %27 = vector.broadcast %c10_i32 : i32 to vector<16x128xi32>
    %28 = arith.cmpi slt, %6, %27 : vector<16x128xi32>
    %29 = math.exp %24 : vector<16x128xf32>
    %30 = arith.select %28, %29, %24 : vector<16x128xi1>, vector<16x128xf32>
    %31 = arith.select %26, %5, %30 : vector<16x128xi1>, vector<16x128xf32>
    %c0_9 = arith.constant 0 : index
    %c0_10 = arith.constant 0 : index
    %32 = vector.load %arg4[%c0_9, %c0_10] : memref<16x128xf32, #tpu.memory_space<vmem>>, vector<16x128xf32>
    tpu.vector_store %arg4[%c0_9, %c0_10], %31 {strides = array<i32>} : memref<16x128xf32, #tpu.memory_space<vmem>>, vector<16x128xf32>,
    return
  }
  func.func @transform_0(%arg0: i32) -> (i32, i32) {
    %c0_i32 = arith.constant 0 : i32
    %c0_i32_0 = arith.constant 0 : i32
    return %arg0, %c0_i32 : i32, i32
  }
  func.func @transform_1(%arg0: i32) -> (i32, i32) {
    %c0_i32 = arith.constant 0 : i32
    %c0_i32_0 = arith.constant 0 : i32
    %c0_i32_1 = arith.constant 0 : i32
    return %c0_i32, %c0_i32_0 : i32, i32
  }
  func.func @transform_2(%arg0: i32) -> (i32, i32) {
    %c0_i32 = arith.constant 0 : i32
    %c0_i32_0 = arith.constant 0 : i32
    %c0_i32_1 = arith.constant 0 : i32
    return %c0_i32, %c0_i32_0 : i32, i32
  }
  func.func @transform_3(%arg0: i32) -> (i32, i32) {
    %c0_i32 = arith.constant 0 : i32
    %c0_i32_0 = arith.constant 0 : i32
    return %arg0, %c0_i32 : i32, i32
  }
}

</mosaic_0001>

<bundles_post_ra>
// kernel: _policy_head_forward_impl.1
= control target key start
LH: loop header
LB: loop body
LE: loop exit
PB: predicated region body
PF: predicated region fallthrough
CT: control target
= control target key end

     0   :  { %vm27_vm0 = vcmask 261120   ;;  %v109_v8 = vlaneseq  ;;  %s243_s1 = inlined_call_operand.vmem [shape: f32[32,128], index: 1, kind: input, shape index: {}]   ;;  %s244_s0 = inlined_call_operand.vmem [shape: f32[16,32], index: 0, kind: input, shape index: {}]   ;;  %s245_s2 = inlined_call_operand.vmem [shape: f32[1,128], index: 2, kind: input, shape index: {}]   ;;  %s246_s3 = inlined_call_operand.vmem [shape: f32[16,128], index: 3, kind: output, shape index: {}]  }
   0x1   :  { %v16_v0 = vld [vmem:[%s243_s1] sm:$0xff]  ;;  %v17_v1 = vld [vmem:[%s243_s1 + $0x8] sm:$0xff]  ;;  %v18_v2 = vld [vmem:[%s243_s1 + $0x10] sm:$0xff] }
   0x2   :  { %v173_v3 = vpack.c.bf16 %v17_v1, %v16_v0  ;;  %v19_v4 = vld [vmem:[%s243_s1 + $0x18] sm:$0xff]  ;;  %v14_v5 = vld [vmem:[%s244_s0] sm:$0xff]  ;;  %v15_v7 = vld [vmem:[%s244_s0 + $0x8] sm:$0xff]  ;;  %v110_v9 = vand.u32 127, %v109_v8 }
   0x3   :  { %v177_v6 = vpack.c.bf16 %v19_v4, %v18_v2  ;;  %170 = vmatprep.mubr.msk.f32.mxu0 %vm27_vm0, %v14_v5  ;;  %v153_v10 = vld [vmem:[%s245_s2] ss:$0 sm:$0xff] }
   0x4   :  { %174 = vmatprep.subr.bf16.mxu0 %v173_v3  ;;  %vm111_vm1 = vcmp.ge.s32.totalorder %v110_v9, 2  ;;  %vm112_vm2 = vcmp.lt.s32.totalorder %v110_v9, 6  ;;  %vm138_vm4 = vcmp.lt.s32.totalorder %v110_v9, 10 }
   0x5   :  { %176 = vmatpush3.bf16.msra.mxu0 %v173_v3  ;;  %vm113_vm3 = vmand %vm111_vm1, %vm112_vm2 }
   0x6   :  { %178 = vmatprep.subr.bf16.mxu0 %v177_v6 }
   0x9   :  { %180 = vmatpush3.bf16.msra.mxu0 %v177_v6 }
   0xc   :  { %171 = vmatmul.mubr.msk.f32.vlgmr.msra.gmra.mrb[0].mxu0 %vm27_vm0, %v15_v7 }
  0xdf   :  { %v172_v11 = vpop.f32.mrb[0].mxu0 }
  0xe0   :  { %v100_v12 = vpop.f32.mrb[1].mxu0  ;;  %v106_v14 = vadd.f32 %v172_v11, %v153_v10 }
  0xe1   :  { %v101_v13 = vadd.f32 %v153_v10, %v100_v12 }
  0xe2   :  { %v115_v16 = vsel %vm113_vm3, %v106_v14, -inf }
  0xe3   :  { %v114_v15 = vsel %vm113_vm3, %v101_v13, -inf }
  0xe4   :  { %116 = vmax.xlane.f32.xlu0 %v114_v15 }
  0xe8   :  { %118 = vmax.xlane.f32.xlu0 %v115_v16 }
 0x171   :  { %v117_v17 = vpop.xlane.xlu0 %116 }
 0x172   :  { %v120_v18 = vsub.f32 %v114_v15, %v117_v17 }
 0x174   :  { %v122_v19 = vmul.f32 1.442695, %v120_v18 }
 0x175   :  { %v119_v20 = vpop.xlane.xlu0 %118 }
 0x176   :  { %v121_v21 = vsub.f32 %v115_v16, %v119_v20  ;;  %181 = vpow2.f32 %v122_v19 }
 0x178   :  { %v124_v22 = vmul.f32 1.442695, %v121_v21 }
 0x17a   :  { %183 = vpow2.f32 %v124_v22 }
 0x180   :  { %v182_v23 = vpop.eup %181 }
 0x181   :  { %126 = vadd.xlane.f32.xlu1 %v182_v23 }
 0x184   :  { %v184_v24 = vpop.eup %183 }
 0x185   :  { %128 = vadd.xlane.f32.xlu1 %v184_v24 }
 0x20e   :  { %v127_v25 = vpop.xlane.xlu1 %126 }
 0x20f   :  { %185 = vlog2.f32 %v127_v25 }
 0x212   :  { %v129_v26 = vpop.xlane.xlu1 %128 }
 0x213   :  { %187 = vlog2.f32 %v129_v26 }
 0x219   :  { %v186_v27 = vpop.eup %185 }
 0x21a   :  { %v131_v28 = vmul.f32 0.6931472, %v186_v27 }
 0x21c   :  { %v134_v29 = vadd.f32 %v131_v28, %v117_v17 }
 0x21d   :  { %v188_v30 = vpop.eup %187 }
 0x21e   :  { %v136_v31 = vsub.f32 %v101_v13, %v134_v29  ;;  %v133_v32 = vmul.f32 0.6931472, %v188_v30 }
 0x220   :  { %v139_v33 = vmul.f32 1.442695, %v136_v31  ;;  %v135_v34 = vadd.f32 %v133_v32, %v119_v20 }
 0x222   :  { %189 = vpow2.f32 %v139_v33  ;;  %v137_v35 = vsub.f32 %v106_v14, %v135_v34 }
 0x224   :  { %v141_v36 = vmul.f32 1.442695, %v137_v35 }
 0x226   :  { %191 = vpow2.f32 %v141_v36 }
 0x22c   :  { %v190_v37 = vpop.eup %189 }
 0x22d   :  { %v143_v38 = vsel %vm138_vm4, %v190_v37, %v136_v31 }
 0x22e   :  { %v145_v39 = vsel %vm112_vm2, %v101_v13, %v143_v38 }
 0x22f   :  { %147 = vst [vmem:[%s246_s3] sm:$0xff] %v145_v39 }
 0x230   :  { %v192_v40 = vpop.eup %191 }
 0x231   :  { %v144_v41 = vsel %vm138_vm4, %v192_v40, %v137_v35 }
 0x232   :  { %v146_v42 = vsel %vm112_vm2, %v106_v14, %v144_v41 }
 0x233   :  { %148 = vst [vmem:[%s246_s3 + $0x8] sm:$0xff] %v146_v42 }

</bundles_post_ra>
